<compile_context>
chip_gen: v7x
topology: tpu7x:2x2x1
jax: 0.10.0
libtpu: 0.0.40
codegen_flags: <defaults>
</compile_context>

<pallas_src>
import functools

import jax
import jax.numpy as jnp
from jax.experimental import pallas as pl
from jax.experimental.pallas import tpu as pltpu


def _fused_generator_kernel(x_ref, w1_ref, b1_ref, w2_ref, b2_ref,
                            w3_ref, b3_ref, o_ref):
    """ReLU(L3(ReLU(L2(ReLU(L1(x)))))) for one (tm, N) batch tile.

    Weights are fully resident in VMEM; intermediates stay on-chip.
    Dots accumulate in f32; bias-add + ReLU are done on the f32 accumulator.
    """
    cdt = w1_ref.dtype  # compute (MXU input) dtype, e.g. bfloat16

    # Layer 1
    h = jnp.dot(x_ref[...], w1_ref[...], preferred_element_type=jnp.float32)
    h = jnp.maximum(h + b1_ref[...], 0.0)
    # Layer 2
    h = jnp.dot(h.astype(cdt), w2_ref[...], preferred_element_type=jnp.float32)
    h = jnp.maximum(h + b2_ref[...], 0.0)
    # Layer 3
    h = jnp.dot(h.astype(cdt), w3_ref[...], preferred_element_type=jnp.float32)
    h = jnp.maximum(h + b3_ref[...], 0.0)

    o_ref[...] = h.astype(o_ref.dtype)


def _choose_tm(M: int) -> int:
    """Batch-tile heuristic.

    <=128 rows: one full-extent tile.  Up to 512 rows: tm=128 (matches v5e's
    128x128 MXU, keeps the f32 intermediate small, and gives >=2 grid steps so
    the 'parallel' axis actually spans both v7x TensorCores).  Larger: tm=256.
    """
    if M <= 128:
        return M
    if M <= 512:
        return 128
    return 256


@functools.partial(jax.jit, static_argnames=("tm", "out_dtype"))
def generator_forward(x, w1, b1, w2, b2, w3, b3, *, tm=None,
                      out_dtype=jnp.bfloat16):
    """Fused 3x(Linear+ReLU) forward pass.

    x : (M, K) activations, already in the compute dtype (e.g. bf16)
    wi: (K_i, N_i) weights, already pre-transposed to (in, out) and pre-cast
        to the compute dtype (see prepare_generator_params)
    bi: (1, N_i) float32 bias rows (added onto the f32 accumulator)
    """
    M, K = x.shape
    K1, N1 = w1.shape
    K2, N2 = w2.shape
    K3, N3 = w3.shape
    assert K == K1 and N1 == K2 and N2 == K3
    assert b1.shape == (1, N1) and b2.shape == (1, N2) and b3.shape == (1, N3)

    if tm is None:
        tm = _choose_tm(M)
    tm = min(tm, M)

    # Ragged batch: pad rows up to a multiple of tm and slice the result.
    m_pad = pl.cdiv(M, tm) * tm
    xp = x if m_pad == M else jnp.pad(x, ((0, m_pad - M), (0, 0)))

    grid = (m_pad // tm,)

    def resident_spec(shape):
        # Constant index_map + single buffering: DMA'd once, stays in VMEM.
        return pl.BlockSpec(shape, lambda i: (0, 0),
                            pipeline_mode=pl.Buffered(1))

    # Rough VMEM budget: single-buffered weights/biases + double-buffered
    # x / out tiles + f32 intermediates.  Only raise the scoped limit when the
    # default (32 MiB) would not fit.
    in_item = jnp.dtype(x.dtype).itemsize
    out_item = jnp.dtype(out_dtype).itemsize
    est_bytes = (in_item * (K1 * N1 + K2 * N2 + K3 * N3)
                 + 4 * (N1 + N2 + N3)
                 + 2 * in_item * tm * K
                 + 2 * out_item * tm * N3
                 + 2 * 4 * tm * max(N1, N2, N3))
    cp_kwargs = dict(dimension_semantics=("parallel",))
    if est_bytes > 32 * 1024 * 1024:
        # TODO(synk): for very large feature widths (~>2k on v7x's 64 MiB VMEM)
        # tile N instead of keeping all three weight matrices fully resident.
        cp_kwargs["vmem_limit_bytes"] = int(min(2 * est_bytes,
                                                100 * 1024 * 1024))

    out = pl.pallas_call(
        _fused_generator_kernel,
        out_shape=jax.ShapeDtypeStruct((m_pad, N3), out_dtype),
        grid=grid,
        in_specs=[
            pl.BlockSpec((tm, K), lambda i: (i, 0)),   # x: tiled over batch
            resident_spec((K1, N1)),                   # W1
            resident_spec((1, N1)),                    # b1
            resident_spec((K2, N2)),                   # W2
            resident_spec((1, N2)),                    # b2
            resident_spec((K3, N3)),                   # W3
            resident_spec((1, N3)),                    # b3
        ],
        out_specs=pl.BlockSpec((tm, N3), lambda i: (i, 0)),
        compiler_params=pltpu.CompilerParams(**cp_kwargs),
    )(xp, w1, b1, w2, b2, w3, b3)

    return out if m_pad == M else out[:M]


def init_generator_params(key, in_channels, out_channels, dtype=jnp.float32):
    """PyTorch-style fan-in uniform init; weights stored pre-transposed (in, out)."""
    params = []
    dims = [(in_channels, out_channels),
            (out_channels, out_channels),
            (out_channels, out_channels)]
    for (fan_in, fan_out) in dims:
        key, kw, kb = jax.random.split(key, 3)
        bound = 1.0 / jnp.sqrt(fan_in)
        w = jax.random.uniform(kw, (fan_in, fan_out), dtype, -bound, bound)
        b = jax.random.uniform(kb, (fan_out,), dtype, -bound, bound)
        params.append((w, b))
    return params


def prepare_generator_params(params, compute_dtype=jnp.bfloat16):
    """One-time prep OUTSIDE the per-call path: cast weights to the compute
    dtype and reshape biases to (1, N) float32 rows.  The jitted forward then
    performs no per-call weight recasting."""
    prepped = []
    for (w, b) in params:
        prepped.append((jnp.asarray(w, compute_dtype),
                        jnp.asarray(b, jnp.float32).reshape(1, -1)))
    return prepped


def generator_forward_ref(x, params, compute_dtype=jnp.bfloat16,
                          out_dtype=jnp.bfloat16):
    """Plain-JAX reference mirroring the kernel's bf16-input / f32-accum math."""
    h = x.astype(compute_dtype)
    acc = None
    for (w, b) in params:
        acc = jnp.dot(h, w.astype(compute_dtype),
                      preferred_element_type=jnp.float32)
        acc = jnp.maximum(acc + b.astype(jnp.float32).reshape(1, -1), 0.0)
        h = acc.astype(compute_dtype)
    return acc.astype(out_dtype)


if __name__ == "__main__":
    # Small shapes consistent with the module (3 stacked Linear+ReLU on the
    # trailing dim; module defaults are 1600/1600, scaled down here).
    batch = 8
    in_channels = 256
    out_channels = 256

    key = jax.random.PRNGKey(0)
    key, kx = jax.random.split(key)
    x = jax.random.normal(kx, (batch, in_channels), dtype=jnp.float32)

    params_f32 = init_generator_params(key, in_channels, out_channels)
    # One-time parameter prep (bf16 weights, (1, N) f32 bias rows).
    (w1, b1), (w2, b2), (w3, b3) = prepare_generator_params(params_f32)

    x_bf16 = x.astype(jnp.bfloat16)
    y = generator_forward(x_bf16, w1, b1, w2, b2, w3, b3)
    y = jax.block_until_ready(y)

    y_ref = generator_forward_ref(x, params_f32)
    assert y.shape == (batch, out_channels)
    assert y.dtype == jnp.bfloat16
    assert jnp.allclose(y.astype(jnp.float32), y_ref.astype(jnp.float32),
                        atol=2e-2, rtol=2e-2), "mismatch vs reference"

    print("KERNEL_OK")
</pallas_src>

<mosaic_0001>
module attributes {stable_mosaic.version = 11 : i64} {
  func.func @_fused_generator_kernel(%arg0: i32, %arg1: memref<8x256xbf16, #tpu.memory_space<vmem>>, %arg2: memref<256x256xbf16, #tpu.memory_space<vmem>>, %arg3: memref<1x256xf32, #tpu.memory_space<vmem>>, %arg4: memref<256x256xbf16, #tpu.memory_space<vmem>>, %arg5: memref<1x256xf32, #tpu.memory_space<vmem>>, %arg6: memref<256x256xbf16, #tpu.memory_space<vmem>>, %arg7: memref<1x256xf32, #tpu.memory_space<vmem>>, %arg8: memref<8x256xbf16, #tpu.memory_space<vmem>>) attributes {dimension_semantics = [#tpu.dimension_semantics<parallel>], iteration_bounds = array<i64: 1>, scalar_prefetch = 0 : i64, scratch_operands = 0 : i64, tpu.core_type = #tpu.core_type<tc>, window_params = [{transform_indices = @transform_0, window_bounds = array<i64: 8, 256>}, {pipeline_mode = #tpu.pipeline_mode<synchronous>, transform_indices = @transform_1, window_bounds = array<i64: 256, 256>}, {pipeline_mode = #tpu.pipeline_mode<synchronous>, transform_indices = @transform_2, window_bounds = array<i64: 1, 256>}, {pipeline_mode = #tpu.pipeline_mode<synchronous>, transform_indices = @transform_3, window_bounds = array<i64: 256, 256>}, {pipeline_mode = #tpu.pipeline_mode<synchronous>, transform_indices = @transform_4, window_bounds = array<i64: 1, 256>}, {pipeline_mode = #tpu.pipeline_mode<synchronous>, transform_indices = @transform_5, window_bounds = array<i64: 256, 256>}, {pipeline_mode = #tpu.pipeline_mode<synchronous>, transform_indices = @transform_6, window_bounds = array<i64: 1, 256>}, {transform_indices = @transform_7, window_bounds = array<i64: 8, 256>}]} {
    %c0 = arith.constant 0 : index
    %c0_0 = arith.constant 0 : index
    %0 = vector.load %arg1[%c0, %c0_0] : memref<8x256xbf16, #tpu.memory_space<vmem>>, vector<8x256xbf16>
    %c0_1 = arith.constant 0 : index
    %c0_2 = arith.constant 0 : index
    %1 = vector.load %arg2[%c0_1, %c0_2] : memref<256x256xbf16, #tpu.memory_space<vmem>>, vector<256x256xbf16>
    %cst = arith.constant dense<0.000000e+00> : vector<8x256xf32>
    %2 = tpu.matmul %0, %1, %cst {dimension_numbers = #tpu.dot_dimension_numbers<[1], [0], [0], [1], [0, 0, 1, 1], [], []>} : vector<8x256xbf16>, vector<256x256xbf16>, vector<8x256xf32> -> vector<8x256xf32>
    %c0_3 = arith.constant 0 : index
    %c0_4 = arith.constant 0 : index
    %3 = vector.load %arg3[%c0_3, %c0_4] : memref<1x256xf32, #tpu.memory_space<vmem>>, vector<1x256xf32>
    %4 = vector.broadcast %3 : vector<1x256xf32> to vector<8x256xf32>
    %5 = arith.addf %2, %4 : vector<8x256xf32>
    %cst_5 = arith.constant 0.000000e+00 : f32
    %6 = vector.broadcast %cst_5 : f32 to vector<8x256xf32>
    %7 = arith.maximumf %5, %6 : vector<8x256xf32>
    %8 = arith.truncf %7 : vector<8x256xf32> to vector<8x256xbf16>
    %c0_6 = arith.constant 0 : index
    %c0_7 = arith.constant 0 : index
    %9 = vector.load %arg4[%c0_6, %c0_7] : memref<256x256xbf16, #tpu.memory_space<vmem>>, vector<256x256xbf16>
    %cst_8 = arith.constant dense<0.000000e+00> : vector<8x256xf32>
    %10 = tpu.matmul %8, %9, %cst_8 {dimension_numbers = #tpu.dot_dimension_numbers<[1], [0], [0], [1], [0, 0, 1, 1], [], []>} : vector<8x256xbf16>, vector<256x256xbf16>, vector<8x256xf32> -> vector<8x256xf32>
    %c0_9 = arith.constant 0 : index
    %c0_10 = arith.constant 0 : index
    %11 = vector.load %arg5[%c0_9, %c0_10] : memref<1x256xf32, #tpu.memory_space<vmem>>, vector<1x256xf32>
    %12 = vector.broadcast %11 : vector<1x256xf32> to vector<8x256xf32>
    %13 = arith.addf %10, %12 : vector<8x256xf32>
    %cst_11 = arith.constant 0.000000e+00 : f32
    %14 = vector.broadcast %cst_11 : f32 to vector<8x256xf32>
    %15 = arith.maximumf %13, %14 : vector<8x256xf32>
    %16 = arith.truncf %15 : vector<8x256xf32> to vector<8x256xbf16>
    %c0_12 = arith.constant 0 : index
    %c0_13 = arith.constant 0 : index
    %17 = vector.load %arg6[%c0_12, %c0_13] : memref<256x256xbf16, #tpu.memory_space<vmem>>, vector<256x256xbf16>
    %cst_14 = arith.constant dense<0.000000e+00> : vector<8x256xf32>
    %18 = tpu.matmul %16, %17, %cst_14 {dimension_numbers = #tpu.dot_dimension_numbers<[1], [0], [0], [1], [0, 0, 1, 1], [], []>} : vector<8x256xbf16>, vector<256x256xbf16>, vector<8x256xf32> -> vector<8x256xf32>
    %c0_15 = arith.constant 0 : index
    %c0_16 = arith.constant 0 : index
    %19 = vector.load %arg7[%c0_15, %c0_16] : memref<1x256xf32, #tpu.memory_space<vmem>>, vector<1x256xf32>
    %20 = vector.broadcast %19 : vector<1x256xf32> to vector<8x256xf32>
    %21 = arith.addf %18, %20 : vector<8x256xf32>
    %cst_17 = arith.constant 0.000000e+00 : f32
    %22 = vector.broadcast %cst_17 : f32 to vector<8x256xf32>
    %23 = arith.maximumf %21, %22 : vector<8x256xf32>
    %24 = arith.truncf %23 : vector<8x256xf32> to vector<8x256xbf16>
    %c0_18 = arith.constant 0 : index
    %c0_19 = arith.constant 0 : index
    %25 = vector.load %arg8[%c0_18, %c0_19] : memref<8x256xbf16, #tpu.memory_space<vmem>>, vector<8x256xbf16>
    tpu.vector_store %arg8[%c0_18, %c0_19], %24 {strides = array<i32>} : memref<8x256xbf16, #tpu.memory_space<vmem>>, vector<8x256xbf16>,
    return
  }
  func.func @transform_0(%arg0: i32) -> (i32, i32) {
    %c0_i32 = arith.constant 0 : i32
    %c0_i32_0 = arith.constant 0 : i32
    return %arg0, %c0_i32 : i32, i32
  }
  func.func @transform_1(%arg0: i32) -> (i32, i32) {
    %c0_i32 = arith.constant 0 : i32
    %c0_i32_0 = arith.constant 0 : i32
    %c0_i32_1 = arith.constant 0 : i32
    return %c0_i32, %c0_i32_0 : i32, i32
  }
  func.func @transform_2(%arg0: i32) -> (i32, i32) {
    %c0_i32 = arith.constant 0 : i32
    %c0_i32_0 = arith.constant 0 : i32
    %c0_i32_1 = arith.constant 0 : i32
    return %c0_i32, %c0_i32_0 : i32, i32
  }
  func.func @transform_3(%arg0: i32) -> (i32, i32) {
    %c0_i32 = arith.constant 0 : i32
    %c0_i32_0 = arith.constant 0 : i32
    %c0_i32_1 = arith.constant 0 : i32
    return %c0_i32, %c0_i32_0 : i32, i32
  }
  func.func @transform_4(%arg0: i32) -> (i32, i32) {
    %c0_i32 = arith.constant 0 : i32
    %c0_i32_0 = arith.constant 0 : i32
    %c0_i32_1 = arith.constant 0 : i32
    return %c0_i32, %c0_i32_0 : i32, i32
  }
  func.func @transform_5(%arg0: i32) -> (i32, i32) {
    %c0_i32 = arith.constant 0 : i32
    %c0_i32_0 = arith.constant 0 : i32
    %c0_i32_1 = arith.constant 0 : i32
    return %c0_i32, %c0_i32_0 : i32, i32
  }
  func.func @transform_6(%arg0: i32) -> (i32, i32) {
    %c0_i32 = arith.constant 0 : i32
    %c0_i32_0 = arith.constant 0 : i32
    %c0_i32_1 = arith.constant 0 : i32
    return %c0_i32, %c0_i32_0 : i32, i32
  }
  func.func @transform_7(%arg0: i32) -> (i32, i32) {
    %c0_i32 = arith.constant 0 : i32
    %c0_i32_0 = arith.constant 0 : i32
    return %arg0, %c0_i32 : i32, i32
  }
}

</mosaic_0001>

<bundles_post_ra>
// kernel: generator_forward.1
= control target key start
LH: loop header
LB: loop body
LE: loop exit
PB: predicated region body
PF: predicated region fallthrough
CT: control target
= control target key end

     0   :  { %12 = vsyncpa [#allocation3], 0  ;;  %s1361_s0 = inlined_call_operand.hbm [shape: bf16[8,256], index: 0, kind: input, shape index: {}]   ;;  %s1362_s1 = inlined_call_operand.hbm [shape: bf16[256,256], index: 1, kind: input, shape index: {}]   ;;  %s1363_s2 = inlined_call_operand.vmem [shape: f32[1,256], index: 2, kind: input, shape index: {}]   ;;  %s1364_s3 = inlined_call_operand.hbm [shape: bf16[256,256], index: 3, kind: input, shape index: {}]   ;;  %s1365_s4 = inlined_call_operand.vmem [shape: f32[1,256], index: 4, kind: input, shape index: {}]   ;;  %s1366_s5 = inlined_call_operand.hbm [shape: bf16[256,256], index: 5, kind: input, shape index: {}]   ;;  %s1367_s6 = inlined_call_operand.vmem [shape: f32[1,256], index: 6, kind: input, shape index: {}]   ;;  %s1368_s7 = inlined_call_operand.hbm [shape: bf16[8,256], index: 7, kind: output, shape index: {}]  }
   0x1   :  { %13 = vsyncpa [#allocation6], 0 }
   0x2   :  { %14 = vsyncpa [#allocation9], 0 }
   0x3   :  { %15 = vsyncpa [#allocation4], 0  ;;  %s1230_s24 = smov [#allocation5]   ;;  %s1112_s28 = scalar_lea.hbm %s1362_s1, 4096 }
   0x4   :  { %s31_s25 = sshll.u32 %s1230_s24, 4  ;;  %p1113_p0 = scmp.ne.s32.totalorder %s1362_s1, %s1112_s28  ;;  %s32_s25 = int_to_ptr.vmem [resolvable:$true] %s31_s25 }
   0x5   :  { %p1116_p1 = scmp.lt.u32.totalorder %s1112_s28, %s1362_s1 }
   0x7   :  { %p1118_p2 = pnand %p1116_p1, %p1113_p0 }
   0x9   :  { %1121 = shalt.err (!%p1118_p2)
}
   0xa   :  { %s1122_s10 = scalar_lea.vmem %s32_s25, 4096  ;;  %p1127_p4 = scmp.lt.s32.totalorder %s32_s25, %s32_s25 }
   0xb   :  { %p1123_p3 = scmp.ne.s32.totalorder %s32_s25, %s1122_s10  ;;  %p1128_p5 = scmp.lt.s32.totalorder %s1122_s10, %s1122_s10 }
   0xd   :  { %p1129_p6 = por %p1128_p5, %p1127_p4 }
   0xf   :  { %p1130_p7 = pnand %p1129_p6, %p1123_p3 }
  0x11   :  { %1133 = shalt.err (!%p1130_p7)
}
  0x12   :  { %s1231_s11 = smov 128   ;;  %s1232_s12 = smov 8  }
  0x13   :  { %37 = dma.hbm_to_vmem [thread:$0]  %s1362_s1, 4096, %s32_s25, [#allocation6], %s1231_s11, %s1231_s11, %s1232_s12  }
  0x14   :  { %s1233_s15 = smov [#allocation2]   ;;  %s1234_s17 = smov [#allocation7]  }
  0x15   :  { %s22_s16 = sshll.u32 %s1233_s15, 4  ;;  %s45_s18 = sshll.u32 %s1234_s17, 4  ;;  %s23_s16 = int_to_ptr.vmem [resolvable:$true] %s22_s16  ;;  %s46_s18 = int_to_ptr.vmem [resolvable:$true] %s45_s18 }
  0x16   :  { %s1134_s21 = scalar_lea.hbm %s1361_s0, 128 }
  0x17   :  { %p1135_p8 = scmp.ne.s32.totalorder %s1361_s0, %s1134_s21  ;;  %p1138_p9 = scmp.lt.u32.totalorder %s1134_s21, %s1361_s0 }
  0x19   :  { %p1140_p10 = pnand %p1138_p9, %p1135_p8 }
  0x1b   :  { %1143 = shalt.err (!%p1140_p10)
}
  0x1c   :  { %s1144_s1 = scalar_lea.vmem %s23_s16, 128  ;;  %p1149_p12 = scmp.lt.s32.totalorder %s23_s16, %s23_s16 }
  0x1d   :  { %p1145_p11 = scmp.ne.s32.totalorder %s23_s16, %s1144_s1  ;;  %p1150_p13 = scmp.lt.s32.totalorder %s1144_s1, %s1144_s1 }
  0x1f   :  { %p1151_p0 = por %p1150_p13, %p1149_p12 }
  0x21   :  { %p1152_p1 = pnand %p1151_p0, %p1145_p11 }
  0x23   :  { %1155 = shalt.err (!%p1152_p1)
}
  0x24   :  { %25 = dma.hbm_to_vmem [thread:$0]  %s1361_s0, 128, %s23_s16, [#allocation3]  }
  0x25   :  { %s1156_s30 = scalar_lea.hbm %s1364_s3, 4096 }
  0x26   :  { %p1157_p2 = scmp.ne.s32.totalorder %s1364_s3, %s1156_s30  ;;  %p1160_p3 = scmp.lt.u32.totalorder %s1156_s30, %s1364_s3 }
  0x28   :  { %p1162_p4 = pnand %p1160_p3, %p1157_p2 }
  0x2a   :  { %1165 = shalt.err (!%p1162_p4)
}
  0x2b   :  { %s1166_s14 = scalar_lea.vmem %s46_s18, 4096  ;;  %p1171_p6 = scmp.lt.s32.totalorder %s46_s18, %s46_s18 }
  0x2c   :  { %p1167_p5 = scmp.ne.s32.totalorder %s46_s18, %s1166_s14  ;;  %p1172_p7 = scmp.lt.s32.totalorder %s1166_s14, %s1166_s14 }
  0x2e   :  { %p1173_p8 = por %p1172_p7, %p1171_p6 }
  0x30   :  { %p1174_p9 = pnand %p1173_p8, %p1167_p5 }
  0x32   :  { %1177 = shalt.err (!%p1174_p9)
}
  0x33   :  { %51 = dma.hbm_to_vmem [thread:$0]  %s1364_s3, 4096, %s46_s18, [#allocation6], %s1231_s11, %s1231_s11, %s1232_s12  }
  0x34   :  { %s1235_s16 = smov [#allocation8]   ;;  %s1178_s21 = scalar_lea.hbm %s1366_s5, 4096 }
  0x35   :  { %s59_s17 = sshll.u32 %s1235_s16, 4  ;;  %p1179_p10 = scmp.ne.s32.totalorder %s1366_s5, %s1178_s21  ;;  %s60_s17 = int_to_ptr.vmem [resolvable:$true] %s59_s17 }
  0x36   :  { %p1182_p11 = scmp.lt.u32.totalorder %s1178_s21, %s1366_s5 }
  0x38   :  { %p1184_p12 = pnand %p1182_p11, %p1179_p10 }
  0x3a   :  { %1187 = shalt.err (!%p1184_p12)
}
  0x3b   :  { %s1188_s1 = scalar_lea.vmem %s60_s17, 4096  ;;  %p1193_p0 = scmp.lt.s32.totalorder %s60_s17, %s60_s17 }
  0x3c   :  { %p1189_p13 = scmp.ne.s32.totalorder %s60_s17, %s1188_s1  ;;  %p1194_p1 = scmp.lt.s32.totalorder %s1188_s1, %s1188_s1 }
  0x3e   :  { %p1195_p2 = por %p1194_p1, %p1193_p0 }
  0x40   :  { %p1196_p3 = pnand %p1195_p2, %p1189_p13 }
  0x42   :  { %1199 = shalt.err (!%p1196_p3)
}
  0x43   :  { %65 = dma.hbm_to_vmem [thread:$0]  %s1366_s5, 4096, %s60_s17, [#allocation9], %s1231_s11, %s1231_s11, %s1232_s12  }
  0x44   :  { %1222 = dma.done.wait [#allocation3], 128  }
  0x45   :  { %1223 = vsyncadd [#allocation3], 4294967168 }
  0x46   :  { %1224 = dma.done.wait [#allocation6], 8192  }
  0x47   :  { %1225 = vsyncadd [#allocation6], 4294959104 }
  0x48   :  { %1226 = dma.done.wait [#allocation9], 4096  }
  0x49   :  { %1227 = vsyncadd [#allocation9], 4294963200  ;;  %v966_v0 = vld [vmem:[#allocation5 + $0x4] ss:$8 sps:$4 sm:$0xff]   ;;  %v968_v1 = vld [vmem:[#allocation5] ss:$8 sps:$4 sm:$0xff]  }
  0x4a   :  { %292 = vmatprep.subr.bf16.mxu0 %v966_v0  ;;  %v969_v2 = vld [vmem:[#allocation5 + $0x14] ss:$8 sps:$4 sm:$0xff]   ;;  %v971_v3 = vld [vmem:[#allocation5 + $0x10] ss:$8 sps:$4 sm:$0xff]   ;;  %v972_v4 = vld [vmem:[#allocation5 + $0x24] ss:$8 sps:$4 sm:$0xff]  }
  0x4b   :  { %293 = vmatpush1.bf16.msra.mxu0 %v968_v1  ;;  %v974_v5 = vld [vmem:[#allocation5 + $0x20] ss:$8 sps:$4 sm:$0xff]   ;;  %v975_v6 = vld [vmem:[#allocation5 + $0x34] ss:$8 sps:$4 sm:$0xff]   ;;  %v977_v7 = vld [vmem:[#allocation5 + $0x30] ss:$8 sps:$4 sm:$0xff]  }
  0x4c   :  { %294 = vmatprep.subr.bf16.mxu0 %v969_v2  ;;  %v978_v8 = vld [vmem:[#allocation5 + $0x44] ss:$8 sps:$4 sm:$0xff]   ;;  %v980_v9 = vld [vmem:[#allocation5 + $0x40] ss:$8 sps:$4 sm:$0xff]   ;;  %v981_v10 = vld [vmem:[#allocation5 + $0x54] ss:$8 sps:$4 sm:$0xff]  }
  0x4d   :  { %v983_v11 = vld [vmem:[#allocation5 + $0x50] ss:$8 sps:$4 sm:$0xff]   ;;  %v984_v12 = vld [vmem:[#allocation5 + $0x64] ss:$8 sps:$4 sm:$0xff]   ;;  %v986_v13 = vld [vmem:[#allocation5 + $0x60] ss:$8 sps:$4 sm:$0xff]  }
  0x4e   :  { %v1334_v14 = vld [vmem:[#allocation2] sm:$0xff]  ;;  %v1016_v16 = vld [vmem:[#allocation7 + $0x4] ss:$8 sps:$4 sm:$0xff]   ;;  %v1018_v17 = vld [vmem:[#allocation7] ss:$8 sps:$4 sm:$0xff]  }
  0x4f   :  { %295 = vmatpush1.bf16.msra.mxu0 %v971_v3  ;;  %v860_v15 = vcombine.high %v1334_v14, %v1334_v14  ;;  %v1019_v18 = vld [vmem:[#allocation7 + $0x14] ss:$8 sps:$4 sm:$0xff]   ;;  %541 = vmatprep.subr.bf16.mxu1 %v1016_v16  ;;  %v989_v20 = vld [vmem:[#allocation5 + $0x70] ss:$8 sps:$4 sm:$0xff]   ;;  %v1022_v22 = vld [vmem:[#allocation7 + $0x24] ss:$8 sps:$4 sm:$0xff]   ;;  %v859_v55 = vcombine.low %v1334_v14, %v1334_v14 }
  0x50   :  { %296 = vmatprep.subr.bf16.mxu0 %v972_v4  ;;  %v987_v19 = vld [vmem:[#allocation5 + $0x74] ss:$8 sps:$4 sm:$0xff]   ;;  %542 = vmatpush1.bf16.msra.mxu1 %v1018_v17  ;;  %v1021_v21 = vld [vmem:[#allocation7 + $0x10] ss:$8 sps:$4 sm:$0xff]   ;;  %v990_v23 = vld [vmem:[#allocation5 + $0x84] ss:$8 sps:$4 sm:$0xff]  }
  0x51   :  { %324 = vmatprep.mubr.bf16.mxu0 %v860_v15  ;;  %543 = vmatprep.subr.bf16.mxu1 %v1019_v18  ;;  %v992_v24 = vld [vmem:[#allocation5 + $0x80] ss:$8 sps:$4 sm:$0xff]   ;;  %v1025_v26 = vld [vmem:[#allocation7 + $0x34] ss:$8 sps:$4 sm:$0xff]   ;;  %v995_v28 = vld [vmem:[#allocation5 + $0x90] ss:$8 sps:$4 sm:$0xff]  }
  0x52   :  { %v1024_v25 = vld [vmem:[#allocation7 + $0x20] ss:$8 sps:$4 sm:$0xff]   ;;  %v993_v27 = vld [vmem:[#allocation5 + $0x94] ss:$8 sps:$4 sm:$0xff]   ;;  %v1027_v29 = vld [vmem:[#allocation7 + $0x30] ss:$8 sps:$4 sm:$0xff]  }
  0x53   :  { %297 = vmatpush1.bf16.msra.mxu0 %v974_v5  ;;  %v1028_v30 = vld [vmem:[#allocation7 + $0x44] ss:$8 sps:$4 sm:$0xff]   ;;  %v998_v32 = vld [vmem:[#allocation5 + $0xa0] ss:$8 sps:$4 sm:$0xff]   ;;  %v1031_v34 = vld [vmem:[#allocation7 + $0x54] ss:$8 sps:$4 sm:$0xff]  }
  0x54   :  { %298 = vmatprep.subr.bf16.mxu0 %v975_v6  ;;  %544 = vmatpush1.bf16.msra.mxu1 %v1021_v21  ;;  %v996_v31 = vld [vmem:[#allocation5 + $0xa4] ss:$8 sps:$4 sm:$0xff]   ;;  %v1030_v33 = vld [vmem:[#allocation7 + $0x40] ss:$8 sps:$4 sm:$0xff]   ;;  %v999_v35 = vld [vmem:[#allocation5 + $0xb4] ss:$8 sps:$4 sm:$0xff]  }
  0x55   :  { %545 = vmatprep.subr.bf16.mxu1 %v1022_v22  ;;  %v1033_v36 = vld [vmem:[#allocation7 + $0x50] ss:$8 sps:$4 sm:$0xff]   ;;  %v1034_v38 = vld [vmem:[#allocation7 + $0x64] ss:$8 sps:$4 sm:$0xff]   ;;  %v1036_v40 = vld [vmem:[#allocation7 + $0x60] ss:$8 sps:$4 sm:$0xff]  }
  0x56   :  { %v1001_v37 = vld [vmem:[#allocation5 + $0xb0] ss:$8 sps:$4 sm:$0xff]   ;;  %v1002_v39 = vld [vmem:[#allocation5 + $0xc4] ss:$8 sps:$4 sm:$0xff]   ;;  %v1004_v41 = vld [vmem:[#allocation5 + $0xc0] ss:$8 sps:$4 sm:$0xff]  }
  0x57   :  { %299 = vmatpush1.bf16.msra.mxu0 %v977_v7  ;;  %v1037_v42 = vld [vmem:[#allocation7 + $0x74] ss:$8 sps:$4 sm:$0xff]   ;;  %v1039_v44 = vld [vmem:[#allocation7 + $0x70] ss:$8 sps:$4 sm:$0xff]   ;;  %v1040_v46 = vld [vmem:[#allocation7 + $0x84] ss:$8 sps:$4 sm:$0xff]  }
  0x58   :  { %300 = vmatprep.subr.bf16.mxu0 %v978_v8  ;;  %546 = vmatpush1.bf16.msra.mxu1 %v1024_v25  ;;  %v1005_v43 = vld [vmem:[#allocation5 + $0xd4] ss:$8 sps:$4 sm:$0xff]   ;;  %v1007_v45 = vld [vmem:[#allocation5 + $0xd0] ss:$8 sps:$4 sm:$0xff]   ;;  %v1008_v47 = vld [vmem:[#allocation5 + $0xe4] ss:$8 sps:$4 sm:$0xff]  }
  0x59   :  { %547 = vmatprep.subr.bf16.mxu1 %v1025_v26  ;;  %v1042_v48 = vld [vmem:[#allocation7 + $0x80] ss:$8 sps:$4 sm:$0xff]   ;;  %v1043_v50 = vld [vmem:[#allocation7 + $0x94] ss:$8 sps:$4 sm:$0xff]   ;;  %v1045_v52 = vld [vmem:[#allocation7 + $0x90] ss:$8 sps:$4 sm:$0xff]  }
  0x5a   :  { %v1010_v49 = vld [vmem:[#allocation5 + $0xe0] ss:$8 sps:$4 sm:$0xff]   ;;  %v1011_v51 = vld [vmem:[#allocation5 + $0xf4] ss:$8 sps:$4 sm:$0xff]   ;;  %v1013_v53 = vld [vmem:[#allocation5 + $0xf0] ss:$8 sps:$4 sm:$0xff]  }
  0x5b   :  { %301 = vmatpush1.bf16.msra.mxu0 %v980_v9  ;;  %v1046_v54 = vld [vmem:[#allocation7 + $0xa4] ss:$8 sps:$4 sm:$0xff]   ;;  %v1048_v56 = vld [vmem:[#allocation7 + $0xa0] ss:$8 sps:$4 sm:$0xff]   ;;  %v1049_v57 = vld [vmem:[#allocation7 + $0xb4] ss:$8 sps:$4 sm:$0xff]  }
  0x5c   :  { %302 = vmatprep.subr.bf16.mxu0 %v981_v10  ;;  %548 = vmatpush1.bf16.msra.mxu1 %v1027_v29  ;;  %v1051_v58 = vld [vmem:[#allocation7 + $0xb0] ss:$8 sps:$4 sm:$0xff]   ;;  %v1052_v59 = vld [vmem:[#allocation7 + $0xc4] ss:$8 sps:$4 sm:$0xff]   ;;  %v1054_v60 = vld [vmem:[#allocation7 + $0xc0] ss:$8 sps:$4 sm:$0xff]  }
  0x5d   :  { %549 = vmatprep.subr.bf16.mxu1 %v1028_v30  ;;  %v1055_v61 = vld [vmem:[#allocation7 + $0xd4] ss:$8 sps:$4 sm:$0xff]   ;;  %v1057_v62 = vld [vmem:[#allocation7 + $0xd0] ss:$8 sps:$4 sm:$0xff]   ;;  %v1058_v63 = vld [vmem:[#allocation7 + $0xe4] ss:$8 sps:$4 sm:$0xff]  }
  0x5e   :  { %v1060_v0 = vld [vmem:[#allocation7 + $0xe0] ss:$8 sps:$4 sm:$0xff]   ;;  %v1061_v1 = vld [vmem:[#allocation7 + $0xf4] ss:$8 sps:$4 sm:$0xff]   ;;  %v1063_v2 = vld [vmem:[#allocation7 + $0xf0] ss:$8 sps:$4 sm:$0xff]  }
  0x5f   :  { %303 = vmatpush1.bf16.msra.mxu0 %v983_v11  ;;  %v1064_v3 = vld [vmem:[#allocation8] ss:$8 sps:$4 sm:$0xff]   ;;  %v1066_v4 = vld [vmem:[#allocation8 + $0x4] ss:$8 sps:$4 sm:$0xff]   ;;  %v1069_v5 = vld [vmem:[#allocation8 + $0x14] ss:$8 sps:$4 sm:$0xff]  }
  0x60   :  { %304 = vmatprep.subr.bf16.mxu0 %v984_v12  ;;  %550 = vmatpush1.bf16.msra.mxu1 %v1030_v33  ;;  %v1067_v6 = vld [vmem:[#allocation8 + $0x10] ss:$8 sps:$4 sm:$0xff]   ;;  %v1072_v7 = vld [vmem:[#allocation8 + $0x24] ss:$8 sps:$4 sm:$0xff]   ;;  %v1070_v8 = vld [vmem:[#allocation8 + $0x20] ss:$8 sps:$4 sm:$0xff]  }
  0x61   :  { %551 = vmatprep.subr.bf16.mxu1 %v1031_v34  ;;  %v1075_v9 = vld [vmem:[#allocation8 + $0x34] ss:$8 sps:$4 sm:$0xff]   ;;  %v1073_v10 = vld [vmem:[#allocation8 + $0x30] ss:$8 sps:$4 sm:$0xff]   ;;  %v1078_v11 = vld [vmem:[#allocation8 + $0x44] ss:$8 sps:$4 sm:$0xff]  }
  0x62   :  { %v1076_v12 = vld [vmem:[#allocation8 + $0x40] ss:$8 sps:$4 sm:$0xff]   ;;  %v1079_v14 = vld [vmem:[#allocation8 + $0x50] ss:$8 sps:$4 sm:$0xff]   ;;  %v1084_v15 = vld [vmem:[#allocation8 + $0x64] ss:$8 sps:$4 sm:$0xff]  }
  0x63   :  { %305 = vmatpush1.bf16.msra.mxu0 %v986_v13  ;;  %v1081_v13 = vld [vmem:[#allocation8 + $0x54] ss:$8 sps:$4 sm:$0xff]   ;;  %v1082_v16 = vld [vmem:[#allocation8 + $0x60] ss:$8 sps:$4 sm:$0xff]   ;;  %v1085_v18 = vld [vmem:[#allocation8 + $0x70] ss:$8 sps:$4 sm:$0xff]  }
  0x64   :  { %306 = vmatprep.subr.bf16.mxu0 %v987_v19  ;;  %552 = vmatpush1.bf16.msra.mxu1 %v1033_v36  ;;  %v1087_v17 = vld [vmem:[#allocation8 + $0x74] ss:$8 sps:$4 sm:$0xff]   ;;  %v1090_v19 = vld [vmem:[#allocation8 + $0x84] ss:$8 sps:$4 sm:$0xff]   ;;  %v1091_v22 = vld [vmem:[#allocation8 + $0x90] ss:$8 sps:$4 sm:$0xff]  }
  0x65   :  { %553 = vmatprep.subr.bf16.mxu1 %v1034_v38  ;;  %v1093_v21 = vld [vmem:[#allocation8 + $0x94] ss:$8 sps:$4 sm:$0xff]   ;;  %v1097_v26 = vld [vmem:[#allocation8 + $0xb0] ss:$8 sps:$4 sm:$0xff]  }
  0x66   :  { %v1099_v25 = vld [vmem:[#allocation8 + $0xb4] ss:$8 sps:$4 sm:$0xff]   ;;  %v1103_v30 = vld [vmem:[#allocation8 + $0xd0] ss:$8 sps:$4 sm:$0xff]  }
  0x67   :  { %307 = vmatpush1.bf16.msra.mxu0 %v989_v20  ;;  %v1088_v20 = vld [vmem:[#allocation8 + $0x80] ss:$8 sps:$4 sm:$0xff]   ;;  %v1105_v29 = vld [vmem:[#allocation8 + $0xd4] ss:$8 sps:$4 sm:$0xff]   ;;  %v113_v34 = vld [vmem:[%s1363_s2] sm:$0x3] }
  0x68   :  { %308 = vmatprep.subr.bf16.mxu0 %v990_v23  ;;  %554 = vmatpush1.bf16.msra.mxu1 %v1036_v40  ;;  %v1096_v23 = vld [vmem:[#allocation8 + $0xa4] ss:$8 sps:$4 sm:$0xff]  }
  0x69   :  { %555 = vmatprep.subr.bf16.mxu1 %v1037_v42 }
  0x6b   :  { %309 = vmatpush1.bf16.msra.mxu0 %v992_v24  ;;  %v1094_v24 = vld [vmem:[#allocation8 + $0xa0] ss:$8 sps:$4 sm:$0xff]  }
  0x6c   :  { %310 = vmatprep.subr.bf16.mxu0 %v993_v27  ;;  %556 = vmatpush1.bf16.msra.mxu1 %v1039_v44  ;;  %v1102_v27 = vld [vmem:[#allocation8 + $0xc4] ss:$8 sps:$4 sm:$0xff]  }
  0x6d   :  { %557 = vmatprep.subr.bf16.mxu1 %v1040_v46 }
  0x6f   :  { %311 = vmatpush1.bf16.msra.mxu0 %v995_v28  ;;  %v1100_v28 = vld [vmem:[#allocation8 + $0xc0] ss:$8 sps:$4 sm:$0xff]  }
  0x70   :  { %312 = vmatprep.subr.bf16.mxu0 %v996_v31  ;;  %558 = vmatpush1.bf16.msra.mxu1 %v1042_v48  ;;  %v115_v31 = vlaneseq  ;;  %v1108_v48 = vld [vmem:[#allocation8 + $0xe4] ss:$8 sps:$4 sm:$0xff]  }
  0x71   :  { %559 = vmatprep.subr.bf16.mxu1 %v1043_v50  ;;  %v1111_v50 = vld [vmem:[#allocation8 + $0xf4] ss:$8 sps:$4 sm:$0xff]  }
  0x73   :  { %313 = vmatpush1.bf16.msra.mxu0 %v998_v32  ;;  %v116_v32 = vshrl.u32 %v115_v31, 7 }
  0x74   :  { %314 = vmatprep.subr.bf16.mxu0 %v999_v35  ;;  %560 = vmatpush1.bf16.msra.mxu1 %v1045_v52  ;;  %v369_v52 = vld [vmem:[%s1365_s4] sm:$0x3]  ;;  %s1236_s4 = smov [#allocation10]  }
  0x75   :  { %561 = vmatprep.subr.bf16.mxu1 %v1046_v54  ;;  %v117_v33 = vsub.s32 0, %v116_v32  ;;  %v121_v35 = vsub.s32 1, %v116_v32  ;;  %s848_s28 = sshll.u32 %s1236_s4, 4  ;;  %s849_s28 = int_to_ptr.vmem [resolvable:$true] %s848_s28 }
  0x76   :  { %s1200_s29 = scalar_lea.vmem %s849_s28, 128  ;;  %p1205_p5 = scmp.lt.s32.totalorder %s849_s28, %s849_s28 }
  0x77   :  { %315 = vmatpush1.bf16.msra.mxu0 %v1001_v37  ;;  %v118_v36 = vrot.slane %v113_v34, %v117_v33  ;;  %v122_v37 = vrot.slane %v113_v34, %v121_v35  ;;  %v378_v54 = vrot.slane %v369_v52, %v121_v35  ;;  %p1201_p4 = scmp.ne.s32.totalorder %s849_s28, %s1200_s29  ;;  %p1206_p6 = scmp.lt.s32.totalorder %s1200_s29, %s1200_s29 }
  0x78   :  { %316 = vmatprep.subr.bf16.mxu0 %v1002_v39  ;;  %562 = vmatpush1.bf16.msra.mxu1 %v1048_v56 }
  0x79   :  { %563 = vmatprep.subr.bf16.mxu1 %v1049_v57  ;;  %p1207_p7 = por %p1206_p6, %p1205_p5 }
  0x7b   :  { %317 = vmatpush1.bf16.msra.mxu0 %v1004_v41  ;;  %p1208_p8 = pnand %p1207_p7, %p1201_p4 }
  0x7c   :  { %318 = vmatprep.subr.bf16.mxu0 %v1005_v43  ;;  %564 = vmatpush1.bf16.msra.mxu1 %v1051_v58 }
  0x7d   :  { %565 = vmatprep.subr.bf16.mxu1 %v1052_v59 }
  0x7f   :  { %319 = vmatpush1.bf16.msra.mxu0 %v1007_v45 }
  0x80   :  { %320 = vmatprep.subr.bf16.mxu0 %v1008_v47  ;;  %566 = vmatpush1.bf16.msra.mxu1 %v1054_v60 }
  0x81   :  { %567 = vmatprep.subr.bf16.mxu1 %v1055_v61 }
  0x83   :  { %321 = vmatpush1.bf16.msra.mxu0 %v1010_v49  ;;  %v1106_v49 = vld [vmem:[#allocation8 + $0xe0] ss:$8 sps:$4 sm:$0xff]  }
  0x84   :  { %322 = vmatprep.subr.bf16.mxu0 %v1011_v51  ;;  %568 = vmatpush1.bf16.msra.mxu1 %v1057_v62  ;;  %v1109_v51 = vld [vmem:[#allocation8 + $0xf0] ss:$8 sps:$4 sm:$0xff]  }
  0x85   :  { %569 = vmatprep.subr.bf16.mxu1 %v1058_v63 }
  0x87   :  { %323 = vmatpush1.bf16.msra.mxu0 %v1013_v53  ;;  %v374_v53 = vrot.slane %v369_v52, %v117_v33 }
  0x88   :  { %570 = vmatpush1.bf16.msra.mxu1 %v1060_v0  ;;  %790 = vmatprep.subr.bf16.mxu0 %v1066_v4 }
  0x89   :  { %571 = vmatprep.subr.bf16.mxu1 %v1061_v1  ;;  %v618_v1 = vld [vmem:[%s1367_s6] sm:$0x3] }
  0x8a   :  { %325 = vmatmul.mubr.bf16.vlgmr.msra.gmra.mrb[0].mxu0 %v859_v55 }
  0x8b   :  { %791 = vmatpush1.bf16.msra.mxu0 %v1064_v3  ;;  %v627_v3 = vrot.slane %v618_v1, %v121_v35 }
  0x8c   :  { %572 = vmatpush1.bf16.msra.mxu1 %v1063_v2  ;;  %792 = vmatprep.subr.bf16.mxu0 %v1069_v5  ;;  %v623_v2 = vrot.slane %v618_v1, %v117_v33 }
  0x8f   :  { %793 = vmatpush1.bf16.msra.mxu0 %v1067_v6 }
  0x90   :  { %794 = vmatprep.subr.bf16.mxu0 %v1072_v7 }
  0x93   :  { %795 = vmatpush1.bf16.msra.mxu0 %v1070_v8 }
  0x94   :  { %796 = vmatprep.subr.bf16.mxu0 %v1075_v9 }
  0x97   :  { %797 = vmatpush1.bf16.msra.mxu0 %v1073_v10 }
  0x98   :  { %798 = vmatprep.subr.bf16.mxu0 %v1078_v11 }
  0x9b   :  { %799 = vmatpush1.bf16.msra.mxu0 %v1076_v12 }
  0x9c   :  { %800 = vmatprep.subr.bf16.mxu0 %v1081_v13 }
  0x9f   :  { %801 = vmatpush1.bf16.msra.mxu0 %v1079_v14 }
  0xa0   :  { %802 = vmatprep.subr.bf16.mxu0 %v1084_v15 }
  0xa3   :  { %803 = vmatpush1.bf16.msra.mxu0 %v1082_v16 }
  0xa4   :  { %804 = vmatprep.subr.bf16.mxu0 %v1087_v17 }
  0xa7   :  { %805 = vmatpush1.bf16.msra.mxu0 %v1085_v18 }
  0xa8   :  { %806 = vmatprep.subr.bf16.mxu0 %v1090_v19 }
  0xab   :  { %807 = vmatpush1.bf16.msra.mxu0 %v1088_v20 }
  0xac   :  { %808 = vmatprep.subr.bf16.mxu0 %v1093_v21 }
  0xaf   :  { %809 = vmatpush1.bf16.msra.mxu0 %v1091_v22 }
  0xb0   :  { %810 = vmatprep.subr.bf16.mxu0 %v1096_v23 }
  0xb3   :  { %811 = vmatpush1.bf16.msra.mxu0 %v1094_v24 }
  0xb4   :  { %812 = vmatprep.subr.bf16.mxu0 %v1099_v25 }
  0xb7   :  { %813 = vmatpush1.bf16.msra.mxu0 %v1097_v26 }
  0xb8   :  { %814 = vmatprep.subr.bf16.mxu0 %v1102_v27 }
  0xbb   :  { %815 = vmatpush1.bf16.msra.mxu0 %v1100_v28 }
  0xbc   :  { %816 = vmatprep.subr.bf16.mxu0 %v1105_v29 }
  0xbf   :  { %817 = vmatpush1.bf16.msra.mxu0 %v1103_v30 }
  0xc0   :  { %818 = vmatprep.subr.bf16.mxu0 %v1108_v48 }
  0xc3   :  { %819 = vmatpush1.bf16.msra.mxu0 %v1106_v49 }
  0xc4   :  { %820 = vmatprep.subr.bf16.mxu0 %v1111_v50 }
  0xc7   :  { %821 = vmatpush1.bf16.msra.mxu0 %v1109_v51 }
 0x15d   :  { %v326_v38 = vpop.f32.mrb[0].mxu0 }
 0x15e   :  { %v327_v39 = vadd.f32 %v326_v38, %v118_v36  ;;  %v328_v40 = vpop.f32.mrb[1].mxu0 }
 0x15f   :  { %v329_v41 = vadd.f32 %v328_v40, %v122_v37  ;;  %v330_v42 = vpop.f32.mrb[2].mxu0 }
 0x160   :  { %v333_v43 = vmax.f32 %v327_v39, 0.0  ;;  %v331_v44 = vpop.f32.mrb[3].mxu0 }
 0x161   :  { %v334_v45 = vmax.f32 %v329_v41, 0.0 }
 0x162   :  { %v335_v47 = vpack.c.bf16 %v333_v43, %v333_v43 }
 0x163   :  { %v336_v46 = vpack.c.bf16 %v334_v45, %v334_v45 }
 0x165   :  { %573 = vmatprep.mubr.bf16.mxu1 %v336_v46 }
 0x166   :  { %574 = vmatmul.mubr.bf16.vlgmr.msra.gmra.mrb[0].mxu1 %v335_v47 }
 0x239   :  { %v575_v55 = vpop.f32.mrb[0].mxu1 }
 0x23a   :  { %v576_v56 = vadd.f32 %v575_v55, %v374_v53  ;;  %v577_v57 = vpop.f32.mrb[1].mxu1 }
 0x23b   :  { %v578_v58 = vadd.f32 %v577_v57, %v378_v54  ;;  %v579_v59 = vpop.f32.mrb[2].mxu1 }
 0x23c   :  { %v582_v60 = vmax.f32 %v576_v56, 0.0  ;;  %v580_v61 = vpop.f32.mrb[3].mxu1 }
 0x23d   :  { %v583_v62 = vmax.f32 %v578_v58, 0.0 }
 0x23e   :  { %v584_v0 = vpack.c.bf16 %v582_v60, %v582_v60 }
 0x23f   :  { %v585_v63 = vpack.c.bf16 %v583_v62, %v583_v62 }
 0x241   :  { %822 = vmatprep.mubr.bf16.mxu0 %v585_v63 }
 0x242   :  { %823 = vmatmul.mubr.bf16.vlgmr.msra.gmra.mrb[4].mxu0 %v584_v0 }
 0x315   :  { %v824_v4 = vpop.f32.mrb[4].mxu0 }
 0x316   :  { %v825_v5 = vadd.f32 %v824_v4, %v623_v2  ;;  %v826_v6 = vpop.f32.mrb[5].mxu0 }
 0x317   :  { %v827_v7 = vadd.f32 %v826_v6, %v627_v3  ;;  %v828_v8 = vpop.f32.mrb[6].mxu0 }
 0x318   :  { %v831_v9 = vmax.f32 %v825_v5, 0.0  ;;  %v829_v10 = vpop.f32.mrb[7].mxu0 }
 0x319   :  { %v832_v11 = vmax.f32 %v827_v7, 0.0 }
 0x31b   :  { %v958_v12 = vpack.c.bf16 %v832_v11, %v831_v9 }
 0x31d   :  { %841 = vst [vmem:[#allocation10] sm:$0xff] %v958_v12 }
 0x31e   :  { %1211 = shalt.err (!%p1208_p8)
}
 0x31f   :  { %s1212_s8 = scalar_lea.hbm %s1368_s7, 128 }
 0x320   :  { %p1213_p9 = scmp.ne.s32.totalorder %s1368_s7, %s1212_s8  ;;  %p1216_p10 = scmp.lt.u32.totalorder %s1212_s8, %s1368_s7 }
 0x322   :  { %p1218_p11 = pnand %p1216_p10, %p1213_p9 }
 0x324   :  { %1221 = shalt.err (!%p1218_p11)
}
 0x325   :  { %851 = dma.vmem_to_hbm [thread:$0]  %s849_s28, 128, %s1368_s7, [#allocation4]  }
 0x326   :  { %1228 = dma.done.wait [#allocation4], 128  }
 0x327   :  { %1229 = vsyncadd [#allocation4], 4294967168 }
 0x328   :  { %855 = vsyncpa [#allocation3], 1 }
 0x329   :  { %856 = vsyncpa [#allocation6], 1 }
 0x32a   :  { %857 = vsyncpa [#allocation9], 1 }
 0x32b   :  { %858 = vsyncpa [#allocation4], 1 }

</bundles_post_ra>
